<compile_context>
chip_gen: v7x
topology: tpu7x:2x2x1
jax: 0.10.0
libtpu: 0.0.40
codegen_flags: <defaults>
</compile_context>

<pallas_src>
import functools

import jax
import jax.numpy as jnp
from jax.experimental import pallas as pl
from jax.experimental.pallas import tpu as pltpu


# ----------------------------------------------------------------------------
# small helpers
# ----------------------------------------------------------------------------
def _round_up(x, m):
    return ((x + m - 1) // m) * m


@functools.lru_cache(maxsize=None)
def _vmem_capacity():
    """Physical VMEM bytes (64 MiB on v7x, 128 MiB on v5e/v6e); safe fallback."""
    try:
        return int(pltpu.get_tpu_info().vmem_capacity_bytes)
    except Exception:
        return 64 * 1024 * 1024


@functools.lru_cache(maxsize=None)
def _co_cap():
    """Max output-channel tile: 128 on v5 parts (128-wide MXU), else 256."""
    try:
        kind = jax.devices()[0].device_kind.lower()
    except Exception:
        return 256
    return 128 if "v5" in kind else 256


# ----------------------------------------------------------------------------
# Pallas kernel: grouped conv tile
#   - builds the patch matrix [CK, tt] in VMEM from the phase-split haloed
#     input block (static shifted lane-slices, one per k//stride group)
#   - one MXU dot per group, bias + leaky_relu in f32, cast at the store
# ----------------------------------------------------------------------------
def _gconv_kernel(w_ref, b_ref, x_ref, o_ref, patch_ref, *,
                  g_tile, QP, rows, tt, slope):
    # w_ref:     [g_tile, co_tile, CK]      bf16   (CK = QP * rows)
    # b_ref:     [g_tile, co_tile, 1]       f32
    # x_ref:     [g_tile, S, Cg, tt + H]    bf16   (rows = S * Cg, H = QP - 1)
    # o_ref:     [g_tile, co_tile, tt]      bf16/f32
    # patch_ref: [CK, tt]                   bf16 VMEM scratch
    for gi in range(g_tile):
        for q in range(QP):
            win = x_ref[gi, :, :, pl.ds(q, tt)]            # [S, Cg, tt]
            patch_ref[pl.ds(q * rows, rows), :] = win.reshape(rows, tt)
        acc = jnp.dot(w_ref[gi], patch_ref[...],
                      preferred_element_type=jnp.float32)   # [co_tile, tt] f32
        acc = acc + b_ref[gi]
        acc = jnp.where(acc >= 0, acc, jnp.float32(slope) * acc)
        o_ref[gi] = acc.astype(o_ref.dtype)


@functools.lru_cache(maxsize=None)
def _build_gconv(G, Cout_g, Cg, S, QP, H, tt, BN, g_tile, co_tile,
                 slope, out_dtype_name, vmem_limit):
    rows = S * Cg
    CK = QP * rows
    win = tt + H
    out_dtype = jnp.dtype(out_dtype_name)
    kernel = functools.partial(_gconv_kernel, g_tile=g_tile, QP=QP, rows=rows,
                               tt=tt, slope=slope)
    call = pl.pallas_call(
        kernel,
        out_shape=jax.ShapeDtypeStruct((G, BN, Cout_g, tt), out_dtype),
        grid=(G // g_tile, Cout_g // co_tile, BN),          # n innermost:
        in_specs=[                                          # weights stay resident
            pl.BlockSpec((g_tile, co_tile, CK), lambda g, c, n: (g, c, 0)),
            pl.BlockSpec((g_tile, co_tile, 1), lambda g, c, n: (g, c, 0)),
            pl.BlockSpec((g_tile, None, S, Cg, win),
                         lambda g, c, n: (g, n, 0, 0, 0)),
        ],
        out_specs=pl.BlockSpec((g_tile, None, co_tile, tt),
                               lambda g, c, n: (g, n, c, 0)),
        scratch_shapes=[pltpu.VMEM((CK, tt), jnp.bfloat16)],
        compiler_params=pltpu.CompilerParams(
            dimension_semantics=("parallel", "parallel", "parallel"),
            vmem_limit_bytes=int(vmem_limit)),
    )
    return jax.jit(call)


# ----------------------------------------------------------------------------
# Conv1d (grouped, strided, zero-padded) + optional leaky_relu
# ----------------------------------------------------------------------------
def conv1d_pallas(x, w, b, *, stride, padding, groups, slope,
                  out_dtype=jnp.bfloat16):
    """x: [B, Cin, T]  w: [Cout, Cin//groups, K]  b: [Cout] -> [B, Cout, T_out]"""
    B, Cin, T = x.shape
    Cout, Cg, K = w.shape
    G = groups
    Cout_g = Cout // G
    S = stride
    T_out = (T + 2 * padding - K) // S + 1

    QP = -(-K // S)            # ceil(K / S) : number of lane-shift groups
    K_pad = QP * S             # K padded so every shift group has S phases
    H = QP - 1                 # halo (in down-sampled time units)
    CK = K_pad * Cg

    g_tile = 1 if G == 1 else min(G, 4)
    co_tile = min(Cout_g, _co_cap())

    # ---- lane tile (tt) sized from per-generation VMEM capacity ------------
    cap = _vmem_capacity()
    budget = int(cap * 0.35)
    out_bytes = jnp.dtype(out_dtype).itemsize

    def _need(t):
        wb = 2 * g_tile * co_tile * CK * 2          # weights (double buffered)
        bb = 2 * g_tile * co_tile * 4               # bias
        xb = 2 * g_tile * S * Cg * (t + H) * 2      # haloed input block
        ob = 2 * g_tile * co_tile * t * out_bytes   # output block
        pb = CK * t * 2                             # patch scratch
        return wb + bb + xb + ob + pb

    tt = 128
    for cand in (2048, 1024, 512, 256, 128):
        if _need(cand) <= budget:
            tt = cand
            break
    tt = min(tt, _round_up(max(T_out, 1), 128))
    n_blocks = -(-T_out // tt)
    BN = B * n_blocks

    # ---- phase-split, haloed input blocks: [G, B*n_blocks, S, Cg, tt+H] ----
    Lj = n_blocks * tt + H
    L = S * Lj
    assert L - T - padding >= 0
    xp = jnp.pad(x.astype(jnp.bfloat16),
                 ((0, 0), (0, 0), (padding, L - T - padding)))
    xph = xp.reshape(B, Cin, Lj, S).transpose(0, 1, 3, 2)       # [B,Cin,S,Lj]
    idx = jnp.arange(n_blocks)[:, None] * tt + jnp.arange(tt + H)[None, :]
    xw = jnp.take(xph, idx, axis=3)                             # [B,Cin,S,nb,tt+H]
    xw = xw.reshape(B, G, Cg, S, n_blocks, tt + H)
    x_blocks = jnp.transpose(xw, (1, 0, 4, 3, 2, 5)).reshape(
        G, BN, S, Cg, tt + H)

    # ---- weights: contraction order (q, p, c), K padded to K_pad, bf16 -----
    w_kp = jnp.pad(w, ((0, 0), (0, 0), (0, K_pad - K)))
    W = jnp.transpose(w_kp, (0, 2, 1)).reshape(G, Cout_g, CK).astype(jnp.bfloat16)
    Bv = b.reshape(G, Cout_g, 1).astype(jnp.float32)

    vmem_limit = int(min(cap * 0.7,
                         max(48 * 1024 * 1024, 2 * _need(tt) + 16 * 1024 * 1024)))
    call = _build_gconv(G, Cout_g, Cg, S, QP, H, tt, BN, g_tile, co_tile,
                        float(slope), jnp.dtype(out_dtype).name, vmem_limit)
    out = call(W, Bv, x_blocks)                                 # [G, BN, Cout_g, tt]

    out = out.reshape(G, B, n_blocks, Cout_g, tt)
    out = jnp.transpose(out, (1, 0, 3, 2, 4)).reshape(B, Cout, n_blocks * tt)
    return out[:, :, :T_out]


def avg_pool1d(x):
    """AvgPool1d(kernel=4, stride=2, padding=2), count_include_pad=True.

    1-channel / tiny -> plain jnp (keeping it off the MXU grouped-matmul path).
    """
    B, C, T = x.shape
    T_out = T // 2 + 1
    xp = jnp.pad(x, ((0, 0), (0, 0), (2, 2)))
    idx = jnp.arange(T_out)[:, None] * 2 + jnp.arange(4)[None, :]
    return jnp.mean(xp[:, :, idx], axis=-1)


# ----------------------------------------------------------------------------
# DiscriminatorS / MultiScaleDiscriminator
# ----------------------------------------------------------------------------
_DISC_CONV_CFG = [
    # (cin, cout, kernel, stride, groups, padding)
    (1, 128, 15, 1, 1, 7),
    (128, 128, 41, 2, 4, 20),
    (128, 256, 41, 2, 16, 20),
    (256, 512, 41, 4, 16, 20),
    (512, 1024, 41, 4, 16, 20),
    (1024, 1024, 41, 1, 16, 20),
    (1024, 1024, 5, 1, 1, 2),
]
_POST_CFG = (1024, 1, 3, 1, 1, 1)


def init_discriminator_params(key):
    params = {"convs": [], "post": None}
    cfgs = _DISC_CONV_CFG + [_POST_CFG]
    for i, (cin, cout, k, _stride, groups, _pad) in enumerate(cfgs):
        wkey, bkey = jax.random.split(jax.random.fold_in(key, i))
        cin_g = cin // groups
        fan_in = cin_g * k
        w = jax.random.normal(wkey, (cout, cin_g, k), jnp.float32) / jnp.sqrt(
            jnp.float32(fan_in))
        b = 0.01 * jax.random.normal(bkey, (cout,), jnp.float32)
        if i < len(_DISC_CONV_CFG):
            params["convs"].append((w, b))
        else:
            params["post"] = (w, b)
    return params


def discriminator_s(params, x, lrelu_slope=0.1):
    fmap = []
    for (w, b), (_cin, _cout, _k, stride, groups, pad) in zip(
            params["convs"], _DISC_CONV_CFG):
        x = conv1d_pallas(x, w, b, stride=stride, padding=pad, groups=groups,
                          slope=lrelu_slope, out_dtype=jnp.bfloat16)
        fmap.append(x)
    w, b = params["post"]
    _cin, _cout, _k, stride, groups, pad = _POST_CFG
    # TODO(synk): the 1024->1 post conv is an M=1 matvec; for peak perf it
    # should be fused into the previous layer's epilogue as a VPU reduction.
    x = conv1d_pallas(x, w, b, stride=stride, padding=pad, groups=groups,
                      slope=1.0, out_dtype=jnp.float32)  # no activation
    fmap.append(x)
    x_flat = x.reshape(x.shape[0], -1)                   # torch.flatten(x, 1, -1)
    return x_flat, fmap


def multi_scale_discriminator(all_params, y, y_hat, lrelu_slope=0.1):
    y_d_rs, y_d_gs, fmap_rs, fmap_gs = [], [], [], []
    for i, params in enumerate(all_params):
        if i != 0:
            y = avg_pool1d(y)
            y_hat = avg_pool1d(y_hat)
        y_d_r, fmap_r = discriminator_s(params, y, lrelu_slope)
        y_d_g, fmap_g = discriminator_s(params, y_hat, lrelu_slope)
        y_d_rs.append(y_d_r)
        fmap_rs.append(fmap_r)
        y_d_gs.append(y_d_g)
        fmap_gs.append(fmap_g)
    return y_d_rs, y_d_gs, fmap_rs, fmap_gs


# ----------------------------------------------------------------------------
# pure-JAX reference (for a one-shot numerical sanity check of the kernel)
# ----------------------------------------------------------------------------
def _reference_conv(x, w, b, *, stride, padding, groups, slope):
    out = jax.lax.conv_general_dilated(
        x, w, window_strides=(stride,), padding=[(padding, padding)],
        dimension_numbers=("NCH", "OIH", "NCH"), feature_group_count=groups)
    out = out + b[None, :, None]
    return jnp.where(out >= 0, out, slope * out)


# ----------------------------------------------------------------------------
if __name__ == "__main__":
    key = jax.random.PRNGKey(0)
    pkey, ykey, gkey, ckey = jax.random.split(key, 4)

    # quick correctness check of the Pallas grouped-conv path (strided + grouped)
    ck1, ck2, ck3 = jax.random.split(ckey, 3)
    xc = jax.random.normal(ck1, (2, 16, 64), jnp.float32)
    wc = jax.random.normal(ck2, (16, 4, 7), jnp.float32) / jnp.sqrt(28.0)
    bc = 0.01 * jax.random.normal(ck3, (16,), jnp.float32)
    got = conv1d_pallas(xc, wc, bc, stride=2, padding=3, groups=4, slope=0.1,
                        out_dtype=jnp.float32)
    ref = _reference_conv(xc, wc, bc, stride=2, padding=3, groups=4, slope=0.1)
    err = float(jnp.max(jnp.abs(got - ref)))
    if err > 0.2:
        raise RuntimeError("conv kernel mismatch: max abs err %.4f" % err)

    # 3 discriminators (spectral-norm vs weight-norm only changes the weight
    # parameterization; synthetic deterministic weights are used here).
    all_params = [init_discriminator_params(jax.random.fold_in(pkey, i))
                  for i in range(3)]

    B, T = 2, 128
    y = jax.random.normal(ykey, (B, 1, T), jnp.float32)
    y_hat = jax.random.normal(gkey, (B, 1, T), jnp.float32)

    outputs = multi_scale_discriminator(all_params, y, y_hat, lrelu_slope=0.1)
    jax.block_until_ready(outputs)
    print("KERNEL_OK")
</pallas_src>

<mosaic_0001>
module attributes {stable_mosaic.version = 11 : i64} {
  func.func @_gconv_kernel(%arg0: i32, %arg1: i32, %arg2: i32, %arg3: memref<4x4x32xbf16, #tpu.memory_space<vmem>>, %arg4: memref<4x4x1xf32, #tpu.memory_space<vmem>>, %arg5: memref<4x1x2x4x131xbf16, #tpu.memory_space<vmem>>, %arg6: memref<4x1x4x128xf32, #tpu.memory_space<vmem>>, %arg7: memref<32x128xbf16, #tpu.memory_space<vmem>>) attributes {dimension_semantics = [#tpu.dimension_semantics<parallel>, #tpu.dimension_semantics<parallel>, #tpu.dimension_semantics<parallel>], iteration_bounds = array<i64: 1, 1, 2>, scalar_prefetch = 0 : i64, scratch_operands = 1 : i64, tpu.core_type = #tpu.core_type<tc>, window_params = [{transform_indices = @transform_0, window_bounds = array<i64: 4, 4, 32>}, {transform_indices = @transform_1, window_bounds = array<i64: 4, 4, 1>}, {transform_indices = @transform_2, window_bounds = array<i64: 4, 1, 2, 4, 131>}, {transform_indices = @transform_3, window_bounds = array<i64: 4, 1, 4, 128>}]} {
    %c0 = arith.constant 0 : index
    %c0_0 = arith.constant 0 : index
    %c0_1 = arith.constant 0 : index
    %c0_2 = arith.constant 0 : index
    %c0_3 = arith.constant 0 : index
    %0 = vector.load %arg5[%c0, %c0_0, %c0_1, %c0_2, %c0_3] : memref<4x1x2x4x131xbf16, #tpu.memory_space<vmem>>, vector<1x1x2x4x128xbf16>
    %1 = vector.shape_cast %0 : vector<1x1x2x4x128xbf16> to vector<2x4x128xbf16>
    %2 = vector.shape_cast %1 : vector<2x4x128xbf16> to vector<8x128xbf16>
    %c0_4 = arith.constant 0 : index
    %c0_5 = arith.constant 0 : index
    %3 = vector.load %arg7[%c0_4, %c0_5] : memref<32x128xbf16, #tpu.memory_space<vmem>>, vector<8x128xbf16>
    tpu.vector_store %arg7[%c0_4, %c0_5], %2 {strides = array<i32>} : memref<32x128xbf16, #tpu.memory_space<vmem>>, vector<8x128xbf16>,
    %c0_6 = arith.constant 0 : index
    %c0_7 = arith.constant 0 : index
    %c0_8 = arith.constant 0 : index
    %c0_9 = arith.constant 0 : index
    %c1 = arith.constant 1 : index
    %4 = vector.load %arg5[%c0_6, %c0_7, %c0_8, %c0_9, %c1] : memref<4x1x2x4x131xbf16, #tpu.memory_space<vmem>>, vector<1x1x2x4x128xbf16>
    %5 = vector.shape_cast %4 : vector<1x1x2x4x128xbf16> to vector<2x4x128xbf16>
    %6 = vector.shape_cast %5 : vector<2x4x128xbf16> to vector<8x128xbf16>
    %c8 = arith.constant 8 : index
    %c0_10 = arith.constant 0 : index
    %7 = vector.load %arg7[%c8, %c0_10] : memref<32x128xbf16, #tpu.memory_space<vmem>>, vector<8x128xbf16>
    tpu.vector_store %arg7[%c8, %c0_10], %6 {strides = array<i32>} : memref<32x128xbf16, #tpu.memory_space<vmem>>, vector<8x128xbf16>,
    %c0_11 = arith.constant 0 : index
    %c0_12 = arith.constant 0 : index
    %c0_13 = arith.constant 0 : index
    %c0_14 = arith.constant 0 : index
    %c2 = arith.constant 2 : index
    %8 = vector.load %arg5[%c0_11, %c0_12, %c0_13, %c0_14, %c2] : memref<4x1x2x4x131xbf16, #tpu.memory_space<vmem>>, vector<1x1x2x4x128xbf16>
    %9 = vector.shape_cast %8 : vector<1x1x2x4x128xbf16> to vector<2x4x128xbf16>
    %10 = vector.shape_cast %9 : vector<2x4x128xbf16> to vector<8x128xbf16>
    %c16 = arith.constant 16 : index
    %c0_15 = arith.constant 0 : index
    %11 = vector.load %arg7[%c16, %c0_15] : memref<32x128xbf16, #tpu.memory_space<vmem>>, vector<8x128xbf16>
    tpu.vector_store %arg7[%c16, %c0_15], %10 {strides = array<i32>} : memref<32x128xbf16, #tpu.memory_space<vmem>>, vector<8x128xbf16>,
    %c0_16 = arith.constant 0 : index
    %c0_17 = arith.constant 0 : index
    %c0_18 = arith.constant 0 : index
    %c0_19 = arith.constant 0 : index
    %c3 = arith.constant 3 : index
    %12 = vector.load %arg5[%c0_16, %c0_17, %c0_18, %c0_19, %c3] : memref<4x1x2x4x131xbf16, #tpu.memory_space<vmem>>, vector<1x1x2x4x128xbf16>
    %13 = vector.shape_cast %12 : vector<1x1x2x4x128xbf16> to vector<2x4x128xbf16>
    %14 = vector.shape_cast %13 : vector<2x4x128xbf16> to vector<8x128xbf16>
    %c24 = arith.constant 24 : index
    %c0_20 = arith.constant 0 : index
    %15 = vector.load %arg7[%c24, %c0_20] : memref<32x128xbf16, #tpu.memory_space<vmem>>, vector<8x128xbf16>
    tpu.vector_store %arg7[%c24, %c0_20], %14 {strides = array<i32>} : memref<32x128xbf16, #tpu.memory_space<vmem>>, vector<8x128xbf16>,
    %c0_21 = arith.constant 0 : index
    %c0_22 = arith.constant 0 : index
    %c0_23 = arith.constant 0 : index
    %16 = vector.load %arg3[%c0_21, %c0_22, %c0_23] : memref<4x4x32xbf16, #tpu.memory_space<vmem>>, vector<1x4x32xbf16>
    %17 = vector.shape_cast %16 : vector<1x4x32xbf16> to vector<4x32xbf16>
    %c0_24 = arith.constant 0 : index
    %c0_25 = arith.constant 0 : index
    %18 = vector.load %arg7[%c0_24, %c0_25] : memref<32x128xbf16, #tpu.memory_space<vmem>>, vector<32x128xbf16>
    %cst = arith.constant dense<0.000000e+00> : vector<4x128xf32>
    %19 = tpu.matmul %17, %18, %cst {dimension_numbers = #tpu.dot_dimension_numbers<[1], [0], [0], [1], [0, 0, 1, 1], [], []>} : vector<4x32xbf16>, vector<32x128xbf16>, vector<4x128xf32> -> vector<4x128xf32>
    %c0_26 = arith.constant 0 : index
    %c0_27 = arith.constant 0 : index
    %c0_28 = arith.constant 0 : index
    %20 = vector.load %arg4[%c0_26, %c0_27, %c0_28] : memref<4x4x1xf32, #tpu.memory_space<vmem>>, vector<1x4x1xf32>
    %21 = vector.shape_cast %20 : vector<1x4x1xf32> to vector<4x1xf32>
    %22 = vector.broadcast %21 : vector<4x1xf32> to vector<4x128xf32>
    %23 = arith.addf %19, %22 : vector<4x128xf32>
    %cst_29 = arith.constant 0.000000e+00 : f32
    %24 = vector.broadcast %cst_29 : f32 to vector<4x128xf32>
    %25 = arith.cmpf oge, %23, %24 : vector<4x128xf32>
    %cst_30 = arith.constant 1.000000e-01 : f32
    %26 = vector.broadcast %cst_30 : f32 to vector<4x128xf32>
    %27 = arith.mulf %26, %23 : vector<4x128xf32>
    %28 = arith.select %25, %23, %27 : vector<4x128xi1>, vector<4x128xf32>
    %c0_31 = arith.constant 0 : index
    %c0_32 = arith.constant 0 : index
    %c0_33 = arith.constant 0 : index
    %c0_34 = arith.constant 0 : index
    %29 = vector.load %arg6[%c0_31, %c0_32, %c0_33, %c0_34] : memref<4x1x4x128xf32, #tpu.memory_space<vmem>>, vector<1x1x4x128xf32>
    %30 = vector.shape_cast %29 : vector<1x1x4x128xf32> to vector<4x128xf32>
    %31 = vector.shape_cast %28 : vector<4x128xf32> to vector<1x1x4x128xf32>
    tpu.vector_store %arg6[%c0_31, %c0_32, %c0_33, %c0_34], %31 {strides = array<i32>} : memref<4x1x4x128xf32, #tpu.memory_space<vmem>>, vector<1x1x4x128xf32>,
    %c1_35 = arith.constant 1 : index
    %c0_36 = arith.constant 0 : index
    %c0_37 = arith.constant 0 : index
    %c0_38 = arith.constant 0 : index
    %c0_39 = arith.constant 0 : index
    %32 = vector.load %arg5[%c1_35, %c0_36, %c0_37, %c0_38, %c0_39] : memref<4x1x2x4x131xbf16, #tpu.memory_space<vmem>>, vector<1x1x2x4x128xbf16>
    %33 = vector.shape_cast %32 : vector<1x1x2x4x128xbf16> to vector<2x4x128xbf16>
    %34 = vector.shape_cast %33 : vector<2x4x128xbf16> to vector<8x128xbf16>
    %c0_40 = arith.constant 0 : index
    %c0_41 = arith.constant 0 : index
    %35 = vector.load %arg7[%c0_40, %c0_41] : memref<32x128xbf16, #tpu.memory_space<vmem>>, vector<8x128xbf16>
    tpu.vector_store %arg7[%c0_40, %c0_41], %34 {strides = array<i32>} : memref<32x128xbf16, #tpu.memory_space<vmem>>, vector<8x128xbf16>,
    %c1_42 = arith.constant 1 : index
    %c0_43 = arith.constant 0 : index
    %c0_44 = arith.constant 0 : index
    %c0_45 = arith.constant 0 : index
    %c1_46 = arith.constant 1 : index
    %36 = vector.load %arg5[%c1_42, %c0_43, %c0_44, %c0_45, %c1_46] : memref<4x1x2x4x131xbf16, #tpu.memory_space<vmem>>, vector<1x1x2x4x128xbf16>
    %37 = vector.shape_cast %36 : vector<1x1x2x4x128xbf16> to vector<2x4x128xbf16>
    %38 = vector.shape_cast %37 : vector<2x4x128xbf16> to vector<8x128xbf16>
    %c8_47 = arith.constant 8 : index
    %c0_48 = arith.constant 0 : index
    %39 = vector.load %arg7[%c8_47, %c0_48] : memref<32x128xbf16, #tpu.memory_space<vmem>>, vector<8x128xbf16>
    tpu.vector_store %arg7[%c8_47, %c0_48], %38 {strides = array<i32>} : memref<32x128xbf16, #tpu.memory_space<vmem>>, vector<8x128xbf16>,
    %c1_49 = arith.constant 1 : index
    %c0_50 = arith.constant 0 : index
    %c0_51 = arith.constant 0 : index
    %c0_52 = arith.constant 0 : index
    %c2_53 = arith.constant 2 : index
    %40 = vector.load %arg5[%c1_49, %c0_50, %c0_51, %c0_52, %c2_53] : memref<4x1x2x4x131xbf16, #tpu.memory_space<vmem>>, vector<1x1x2x4x128xbf16>
    %41 = vector.shape_cast %40 : vector<1x1x2x4x128xbf16> to vector<2x4x128xbf16>
    %42 = vector.shape_cast %41 : vector<2x4x128xbf16> to vector<8x128xbf16>
    %c16_54 = arith.constant 16 : index
    %c0_55 = arith.constant 0 : index
    %43 = vector.load %arg7[%c16_54, %c0_55] : memref<32x128xbf16, #tpu.memory_space<vmem>>, vector<8x128xbf16>
    tpu.vector_store %arg7[%c16_54, %c0_55], %42 {strides = array<i32>} : memref<32x128xbf16, #tpu.memory_space<vmem>>, vector<8x128xbf16>,
    %c1_56 = arith.constant 1 : index
    %c0_57 = arith.constant 0 : index
    %c0_58 = arith.constant 0 : index
    %c0_59 = arith.constant 0 : index
    %c3_60 = arith.constant 3 : index
    %44 = vector.load %arg5[%c1_56, %c0_57, %c0_58, %c0_59, %c3_60] : memref<4x1x2x4x131xbf16, #tpu.memory_space<vmem>>, vector<1x1x2x4x128xbf16>
    %45 = vector.shape_cast %44 : vector<1x1x2x4x128xbf16> to vector<2x4x128xbf16>
    %46 = vector.shape_cast %45 : vector<2x4x128xbf16> to vector<8x128xbf16>
    %c24_61 = arith.constant 24 : index
    %c0_62 = arith.constant 0 : index
    %47 = vector.load %arg7[%c24_61, %c0_62] : memref<32x128xbf16, #tpu.memory_space<vmem>>, vector<8x128xbf16>
    tpu.vector_store %arg7[%c24_61, %c0_62], %46 {strides = array<i32>} : memref<32x128xbf16, #tpu.memory_space<vmem>>, vector<8x128xbf16>,
    %c1_63 = arith.constant 1 : index
    %c0_64 = arith.constant 0 : index
    %c0_65 = arith.constant 0 : index
    %48 = vector.load %arg3[%c1_63, %c0_64, %c0_65] : memref<4x4x32xbf16, #tpu.memory_space<vmem>>, vector<1x4x32xbf16>
    %49 = vector.shape_cast %48 : vector<1x4x32xbf16> to vector<4x32xbf16>
    %c0_66 = arith.constant 0 : index
    %c0_67 = arith.constant 0 : index
    %50 = vector.load %arg7[%c0_66, %c0_67] : memref<32x128xbf16, #tpu.memory_space<vmem>>, vector<32x128xbf16>
    %cst_68 = arith.constant dense<0.000000e+00> : vector<4x128xf32>
    %51 = tpu.matmul %49, %50, %cst_68 {dimension_numbers = #tpu.dot_dimension_numbers<[1], [0], [0], [1], [0, 0, 1, 1], [], []>} : vector<4x32xbf16>, vector<32x128xbf16>, vector<4x128xf32> -> vector<4x128xf32>
    %c1_69 = arith.constant 1 : index
    %c0_70 = arith.constant 0 : index
    %c0_71 = arith.constant 0 : index
    %52 = vector.load %arg4[%c1_69, %c0_70, %c0_71] : memref<4x4x1xf32, #tpu.memory_space<vmem>>, vector<1x4x1xf32>
    %53 = vector.shape_cast %52 : vector<1x4x1xf32> to vector<4x1xf32>
    %54 = vector.broadcast %53 : vector<4x1xf32> to vector<4x128xf32>
    %55 = arith.addf %51, %54 : vector<4x128xf32>
    %cst_72 = arith.constant 0.000000e+00 : f32
    %56 = vector.broadcast %cst_72 : f32 to vector<4x128xf32>
    %57 = arith.cmpf oge, %55, %56 : vector<4x128xf32>
    %cst_73 = arith.constant 1.000000e-01 : f32
    %58 = vector.broadcast %cst_73 : f32 to vector<4x128xf32>
    %59 = arith.mulf %58, %55 : vector<4x128xf32>
    %60 = arith.select %57, %55, %59 : vector<4x128xi1>, vector<4x128xf32>
    %c1_74 = arith.constant 1 : index
    %c0_75 = arith.constant 0 : index
    %c0_76 = arith.constant 0 : index
    %c0_77 = arith.constant 0 : index
    %61 = vector.load %arg6[%c1_74, %c0_75, %c0_76, %c0_77] : memref<4x1x4x128xf32, #tpu.memory_space<vmem>>, vector<1x1x4x128xf32>
    %62 = vector.shape_cast %61 : vector<1x1x4x128xf32> to vector<4x128xf32>
    %63 = vector.shape_cast %60 : vector<4x128xf32> to vector<1x1x4x128xf32>
    tpu.vector_store %arg6[%c1_74, %c0_75, %c0_76, %c0_77], %63 {strides = array<i32>} : memref<4x1x4x128xf32, #tpu.memory_space<vmem>>, vector<1x1x4x128xf32>,
    %c2_78 = arith.constant 2 : index
    %c0_79 = arith.constant 0 : index
    %c0_80 = arith.constant 0 : index
    %c0_81 = arith.constant 0 : index
    %c0_82 = arith.constant 0 : index
    %64 = vector.load %arg5[%c2_78, %c0_79, %c0_80, %c0_81, %c0_82] : memref<4x1x2x4x131xbf16, #tpu.memory_space<vmem>>, vector<1x1x2x4x128xbf16>
    %65 = vector.shape_cast %64 : vector<1x1x2x4x128xbf16> to vector<2x4x128xbf16>
    %66 = vector.shape_cast %65 : vector<2x4x128xbf16> to vector<8x128xbf16>
    %c0_83 = arith.constant 0 : index
    %c0_84 = arith.constant 0 : index
    %67 = vector.load %arg7[%c0_83, %c0_84] : memref<32x128xbf16, #tpu.memory_space<vmem>>, vector<8x128xbf16>
    tpu.vector_store %arg7[%c0_83, %c0_84], %66 {strides = array<i32>} : memref<32x128xbf16, #tpu.memory_space<vmem>>, vector<8x128xbf16>,
    %c2_85 = arith.constant 2 : index
    %c0_86 = arith.constant 0 : index
    %c0_87 = arith.constant 0 : index
    %c0_88 = arith.constant 0 : index
    %c1_89 = arith.constant 1 : index
    %68 = vector.load %arg5[%c2_85, %c0_86, %c0_87, %c0_88, %c1_89] : memref<4x1x2x4x131xbf16, #tpu.memory_space<vmem>>, vector<1x1x2x4x128xbf16>
    %69 = vector.shape_cast %68 : vector<1x1x2x4x128xbf16> to vector<2x4x128xbf16>
    %70 = vector.shape_cast %69 : vector<2x4x128xbf16> to vector<8x128xbf16>
    %c8_90 = arith.constant 8 : index
    %c0_91 = arith.constant 0 : index
    %71 = vector.load %arg7[%c8_90, %c0_91] : memref<32x128xbf16, #tpu.memory_space<vmem>>, vector<8x128xbf16>
    tpu.vector_store %arg7[%c8_90, %c0_91], %70 {strides = array<i32>} : memref<32x128xbf16, #tpu.memory_space<vmem>>, vector<8x128xbf16>,
    %c2_92 = arith.constant 2 : index
    %c0_93 = arith.constant 0 : index
    %c0_94 = arith.constant 0 : index
    %c0_95 = arith.constant 0 : index
    %c2_96 = arith.constant 2 : index
    %72 = vector.load %arg5[%c2_92, %c0_93, %c0_94, %c0_95, %c2_96] : memref<4x1x2x4x131xbf16, #tpu.memory_space<vmem>>, vector<1x1x2x4x128xbf16>
    %73 = vector.shape_cast %72 : vector<1x1x2x4x128xbf16> to vector<2x4x128xbf16>
    %74 = vector.shape_cast %73 : vector<2x4x128xbf16> to vector<8x128xbf16>
    %c16_97 = arith.constant 16 : index
    %c0_98 = arith.constant 0 : index
    %75 = vector.load %arg7[%c16_97, %c0_98] : memref<32x128xbf16, #tpu.memory_space<vmem>>, vector<8x128xbf16>
    tpu.vector_store %arg7[%c16_97, %c0_98], %74 {strides = array<i32>} : memref<32x128xbf16, #tpu.memory_space<vmem>>, vector<8x128xbf16>,
    %c2_99 = arith.constant 2 : index
    %c0_100 = arith.constant 0 : index
    %c0_101 = arith.constant 0 : index
    %c0_102 = arith.constant 0 : index
    %c3_103 = arith.constant 3 : index
    %76 = vector.load %arg5[%c2_99, %c0_100, %c0_101, %c0_102, %c3_103] : memref<4x1x2x4x131xbf16, #tpu.memory_space<vmem>>, vector<1x1x2x4x128xbf16>
    %77 = vector.shape_cast %76 : vector<1x1x2x4x128xbf16> to vector<2x4x128xbf16>
    %78 = vector.shape_cast %77 : vector<2x4x128xbf16> to vector<8x128xbf16>
    %c24_104 = arith.constant 24 : index
    %c0_105 = arith.constant 0 : index
    %79 = vector.load %arg7[%c24_104, %c0_105] : memref<32x128xbf16, #tpu.memory_space<vmem>>, vector<8x128xbf16>
    tpu.vector_store %arg7[%c24_104, %c0_105], %78 {strides = array<i32>} : memref<32x128xbf16, #tpu.memory_space<vmem>>, vector<8x128xbf16>,
    %c2_106 = arith.constant 2 : index
    %c0_107 = arith.constant 0 : index
    %c0_108 = arith.constant 0 : index
    %80 = vector.load %arg3[%c2_106, %c0_107, %c0_108] : memref<4x4x32xbf16, #tpu.memory_space<vmem>>, vector<1x4x32xbf16>
    %81 = vector.shape_cast %80 : vector<1x4x32xbf16> to vector<4x32xbf16>
    %c0_109 = arith.constant 0 : index
    %c0_110 = arith.constant 0 : index
    %82 = vector.load %arg7[%c0_109, %c0_110] : memref<32x128xbf16, #tpu.memory_space<vmem>>, vector<32x128xbf16>
    %cst_111 = arith.constant dense<0.000000e+00> : vector<4x128xf32>
    %83 = tpu.matmul %81, %82, %cst_111 {dimension_numbers = #tpu.dot_dimension_numbers<[1], [0], [0], [1], [0, 0, 1, 1], [], []>} : vector<4x32xbf16>, vector<32x128xbf16>, vector<4x128xf32> -> vector<4x128xf32>
    %c2_112 = arith.constant 2 : index
    %c0_113 = arith.constant 0 : index
    %c0_114 = arith.constant 0 : index
    %84 = vector.load %arg4[%c2_112, %c0_113, %c0_114] : memref<4x4x1xf32, #tpu.memory_space<vmem>>, vector<1x4x1xf32>
    %85 = vector.shape_cast %84 : vector<1x4x1xf32> to vector<4x1xf32>
    %86 = vector.broadcast %85 : vector<4x1xf32> to vector<4x128xf32>
    %87 = arith.addf %83, %86 : vector<4x128xf32>
    %cst_115 = arith.constant 0.000000e+00 : f32
    %88 = vector.broadcast %cst_115 : f32 to vector<4x128xf32>
    %89 = arith.cmpf oge, %87, %88 : vector<4x128xf32>
    %cst_116 = arith.constant 1.000000e-01 : f32
    %90 = vector.broadcast %cst_116 : f32 to vector<4x128xf32>
    %91 = arith.mulf %90, %87 : vector<4x128xf32>
    %92 = arith.select %89, %87, %91 : vector<4x128xi1>, vector<4x128xf32>
    %c2_117 = arith.constant 2 : index
    %c0_118 = arith.constant 0 : index
    %c0_119 = arith.constant 0 : index
    %c0_120 = arith.constant 0 : index
    %93 = vector.load %arg6[%c2_117, %c0_118, %c0_119, %c0_120] : memref<4x1x4x128xf32, #tpu.memory_space<vmem>>, vector<1x1x4x128xf32>
    %94 = vector.shape_cast %93 : vector<1x1x4x128xf32> to vector<4x128xf32>
    %95 = vector.shape_cast %92 : vector<4x128xf32> to vector<1x1x4x128xf32>
    tpu.vector_store %arg6[%c2_117, %c0_118, %c0_119, %c0_120], %95 {strides = array<i32>} : memref<4x1x4x128xf32, #tpu.memory_space<vmem>>, vector<1x1x4x128xf32>,
    %c3_121 = arith.constant 3 : index
    %c0_122 = arith.constant 0 : index
    %c0_123 = arith.constant 0 : index
    %c0_124 = arith.constant 0 : index
    %c0_125 = arith.constant 0 : index
    %96 = vector.load %arg5[%c3_121, %c0_122, %c0_123, %c0_124, %c0_125] : memref<4x1x2x4x131xbf16, #tpu.memory_space<vmem>>, vector<1x1x2x4x128xbf16>
    %97 = vector.shape_cast %96 : vector<1x1x2x4x128xbf16> to vector<2x4x128xbf16>
    %98 = vector.shape_cast %97 : vector<2x4x128xbf16> to vector<8x128xbf16>
    %c0_126 = arith.constant 0 : index
    %c0_127 = arith.constant 0 : index
    %99 = vector.load %arg7[%c0_126, %c0_127] : memref<32x128xbf16, #tpu.memory_space<vmem>>, vector<8x128xbf16>
    tpu.vector_store %arg7[%c0_126, %c0_127], %98 {strides = array<i32>} : memref<32x128xbf16, #tpu.memory_space<vmem>>, vector<8x128xbf16>,
    %c3_128 = arith.constant 3 : index
    %c0_129 = arith.constant 0 : index
    %c0_130 = arith.constant 0 : index
    %c0_131 = arith.constant 0 : index
    %c1_132 = arith.constant 1 : index
    %100 = vector.load %arg5[%c3_128, %c0_129, %c0_130, %c0_131, %c1_132] : memref<4x1x2x4x131xbf16, #tpu.memory_space<vmem>>, vector<1x1x2x4x128xbf16>
    %101 = vector.shape_cast %100 : vector<1x1x2x4x128xbf16> to vector<2x4x128xbf16>
    %102 = vector.shape_cast %101 : vector<2x4x128xbf16> to vector<8x128xbf16>
    %c8_133 = arith.constant 8 : index
    %c0_134 = arith.constant 0 : index
    %103 = vector.load %arg7[%c8_133, %c0_134] : memref<32x128xbf16, #tpu.memory_space<vmem>>, vector<8x128xbf16>
    tpu.vector_store %arg7[%c8_133, %c0_134], %102 {strides = array<i32>} : memref<32x128xbf16, #tpu.memory_space<vmem>>, vector<8x128xbf16>,
    %c3_135 = arith.constant 3 : index
    %c0_136 = arith.constant 0 : index
    %c0_137 = arith.constant 0 : index
    %c0_138 = arith.constant 0 : index
    %c2_139 = arith.constant 2 : index
    %104 = vector.load %arg5[%c3_135, %c0_136, %c0_137, %c0_138, %c2_139] : memref<4x1x2x4x131xbf16, #tpu.memory_space<vmem>>, vector<1x1x2x4x128xbf16>
    %105 = vector.shape_cast %104 : vector<1x1x2x4x128xbf16> to vector<2x4x128xbf16>
    %106 = vector.shape_cast %105 : vector<2x4x128xbf16> to vector<8x128xbf16>
    %c16_140 = arith.constant 16 : index
    %c0_141 = arith.constant 0 : index
    %107 = vector.load %arg7[%c16_140, %c0_141] : memref<32x128xbf16, #tpu.memory_space<vmem>>, vector<8x128xbf16>
    tpu.vector_store %arg7[%c16_140, %c0_141], %106 {strides = array<i32>} : memref<32x128xbf16, #tpu.memory_space<vmem>>, vector<8x128xbf16>,
    %c3_142 = arith.constant 3 : index
    %c0_143 = arith.constant 0 : index
    %c0_144 = arith.constant 0 : index
    %c0_145 = arith.constant 0 : index
    %c3_146 = arith.constant 3 : index
    %108 = vector.load %arg5[%c3_142, %c0_143, %c0_144, %c0_145, %c3_146] : memref<4x1x2x4x131xbf16, #tpu.memory_space<vmem>>, vector<1x1x2x4x128xbf16>
    %109 = vector.shape_cast %108 : vector<1x1x2x4x128xbf16> to vector<2x4x128xbf16>
    %110 = vector.shape_cast %109 : vector<2x4x128xbf16> to vector<8x128xbf16>
    %c24_147 = arith.constant 24 : index
    %c0_148 = arith.constant 0 : index
    %111 = vector.load %arg7[%c24_147, %c0_148] : memref<32x128xbf16, #tpu.memory_space<vmem>>, vector<8x128xbf16>
    tpu.vector_store %arg7[%c24_147, %c0_148], %110 {strides = array<i32>} : memref<32x128xbf16, #tpu.memory_space<vmem>>, vector<8x128xbf16>,
    %c3_149 = arith.constant 3 : index
    %c0_150 = arith.constant 0 : index
    %c0_151 = arith.constant 0 : index
    %112 = vector.load %arg3[%c3_149, %c0_150, %c0_151] : memref<4x4x32xbf16, #tpu.memory_space<vmem>>, vector<1x4x32xbf16>
    %113 = vector.shape_cast %112 : vector<1x4x32xbf16> to vector<4x32xbf16>
    %c0_152 = arith.constant 0 : index
    %c0_153 = arith.constant 0 : index
    %114 = vector.load %arg7[%c0_152, %c0_153] : memref<32x128xbf16, #tpu.memory_space<vmem>>, vector<32x128xbf16>
    %cst_154 = arith.constant dense<0.000000e+00> : vector<4x128xf32>
    %115 = tpu.matmul %113, %114, %cst_154 {dimension_numbers = #tpu.dot_dimension_numbers<[1], [0], [0], [1], [0, 0, 1, 1], [], []>} : vector<4x32xbf16>, vector<32x128xbf16>, vector<4x128xf32> -> vector<4x128xf32>
    %c3_155 = arith.constant 3 : index
    %c0_156 = arith.constant 0 : index
    %c0_157 = arith.constant 0 : index
    %116 = vector.load %arg4[%c3_155, %c0_156, %c0_157] : memref<4x4x1xf32, #tpu.memory_space<vmem>>, vector<1x4x1xf32>
    %117 = vector.shape_cast %116 : vector<1x4x1xf32> to vector<4x1xf32>
    %118 = vector.broadcast %117 : vector<4x1xf32> to vector<4x128xf32>
    %119 = arith.addf %115, %118 : vector<4x128xf32>
    %cst_158 = arith.constant 0.000000e+00 : f32
    %120 = vector.broadcast %cst_158 : f32 to vector<4x128xf32>
    %121 = arith.cmpf oge, %119, %120 : vector<4x128xf32>
    %cst_159 = arith.constant 1.000000e-01 : f32
    %122 = vector.broadcast %cst_159 : f32 to vector<4x128xf32>
    %123 = arith.mulf %122, %119 : vector<4x128xf32>
    %124 = arith.select %121, %119, %123 : vector<4x128xi1>, vector<4x128xf32>
    %c3_160 = arith.constant 3 : index
    %c0_161 = arith.constant 0 : index
    %c0_162 = arith.constant 0 : index
    %c0_163 = arith.constant 0 : index
    %125 = vector.load %arg6[%c3_160, %c0_161, %c0_162, %c0_163] : memref<4x1x4x128xf32, #tpu.memory_space<vmem>>, vector<1x1x4x128xf32>
    %126 = vector.shape_cast %125 : vector<1x1x4x128xf32> to vector<4x128xf32>
    %127 = vector.shape_cast %124 : vector<4x128xf32> to vector<1x1x4x128xf32>
    tpu.vector_store %arg6[%c3_160, %c0_161, %c0_162, %c0_163], %127 {strides = array<i32>} : memref<4x1x4x128xf32, #tpu.memory_space<vmem>>, vector<1x1x4x128xf32>,
    return
  }
  func.func @transform_0(%arg0: i32, %arg1: i32, %arg2: i32) -> (i32, i32, i32) {
    %c0_i32 = arith.constant 0 : i32
    %c0_i32_0 = arith.constant 0 : i32
    return %arg0, %arg1, %c0_i32 : i32, i32, i32
  }
  func.func @transform_1(%arg0: i32, %arg1: i32, %arg2: i32) -> (i32, i32, i32) {
    %c0_i32 = arith.constant 0 : i32
    %c0_i32_0 = arith.constant 0 : i32
    return %arg0, %arg1, %c0_i32 : i32, i32, i32
  }
  func.func @transform_2(%arg0: i32, %arg1: i32, %arg2: i32) -> (i32, i32, i32, i32, i32) {
    %c0_i32 = arith.constant 0 : i32
    %c0_i32_0 = arith.constant 0 : i32
    %c0_i32_1 = arith.constant 0 : i32
    %c0_i32_2 = arith.constant 0 : i32
    return %arg0, %arg2, %c0_i32, %c0_i32_0, %c0_i32_1 : i32, i32, i32, i32, i32
  }
  func.func @transform_3(%arg0: i32, %arg1: i32, %arg2: i32) -> (i32, i32, i32, i32) {
    %c0_i32 = arith.constant 0 : i32
    %c0_i32_0 = arith.constant 0 : i32
    return %arg0, %arg2, %arg1, %c0_i32 : i32, i32, i32, i32
  }
}

</mosaic_0001>

<bundles_post_ra>
// kernel: tpu_custom_call.1
= control target key start
LH: loop header
LB: loop body
LE: loop exit
PB: predicated region body
PF: predicated region fallthrough
CT: control target
= control target key end

     0   :  { %8 = vsyncpa [#allocation4], 0  ;;  %s1582_s0 = inlined_call_operand.vmem [shape: bf16[4,4,32], index: 0, kind: input, shape index: {}]   ;;  %s1583_s1 = inlined_call_operand.vmem [shape: f32[4,4,1], index: 1, kind: input, shape index: {}]   ;;  %s1584_s2 = inlined_call_operand.hbm [shape: bf16[4,2,2,4,131], index: 2, kind: input, shape index: {}]   ;;  %s1585_s3 = inlined_call_operand.hbm [shape: f32[4,2,4,128], index: 3, kind: output, shape index: {}]  }
   0x1   :  { %10 = vsyncpa [#allocation4 + $0x1], 0 }
   0x2   :  { %11 = vsyncpa [#allocation5], 0 }
   0x3   :  { %13 = vsyncpa [#allocation5 + $0x1], 0  ;;  %s1324_s12 = smov 0   ;;  %s1326_s13 = smov 0  }
   0x4   :  { %s1328_s14 = smov 0   ;;  %s1330_s15 = smov 0  }
   0x5   :  { %s1332_s16 = smov 0   ;;  %s1334_s17 = smov 0  }
   0x6 LB: > { %s990_s18 = sadd.s32 4294967295, %s1286_s17   ;;  %s991_s19 = sadd.s32 4294967294, %s1286_s17   ;;  %s1286_s17 = sphi %s1334_s17, %s19_s17   ;;  %s1282_s16 = sphi %s1332_s16, %s1594_s16   ;;  %s1278_s15 = sphi %s1330_s15, %s1593_s15   ;;  %s1274_s14 = sphi %s1328_s14, %s1592_s14   ;;  %s1270_s13 = sphi %s1326_s13, %s1591_s13   ;;  %s1266_s12 = sphi %s1324_s12, %s1590_s12  }
   0x7   : > { %s31_s20 = sadd.s32 1, %s1282_s16  ;;  %s103_s21 = sadd.s32 1, %s1274_s14 }
   0x8   : > { %p32_p0 = scmp.ge.s32.totalorder %s31_s20, 2  ;;  %p110_p1 = scmp.ne.s32.totalorder %s1274_s14, %s1270_s13 }
   0x9   : > { %p111_p2 = scmp.eq.s32.totalorder %s1286_s17, 0  ;;  %p116_p3 = scmp.ne.s32.totalorder %s1270_s13, %s1266_s12 }
   0xa   : > { %s1596_s20 = smov (%p32_p0, %s31_s20), 0  ;;  %p117_p5 = scmp.eq.s32.totalorder %s990_s18, 0 }
   0xb   : > { %p1365_p4 = por %p111_p2, %p110_p1  ;;  %s99_s23 = ssub.s32 %s1282_s16, %s1596_s20 }
   0xc   : > { %p144_p6 = scmp.eq.s32.totalorder %s990_s18, 1  ;;  %p101_p7 = scmp.eq.s32.totalorder %s99_s23, 0 }
   0xd   : > { %p1371_p8 = por %p117_p5, %p116_p3  ;;  %p150_p10 = scmp.eq.s32.totalorder %s991_s19, 1 }
   0xe   : > { %p1375_p9 = por %p144_p6, %p110_p1  ;;  %p995_p12 = scmp.ge.s32.totalorder %s1286_s17, 2 }
   0xf   : > { %s1380_s26 = scalar_select %p101_p7, %s1274_s14, %s103_s21  }
  0x10   : > { %p1382_p11 = por %p150_p10, %p116_p3  ;;  %190 = sbr.rel (%p995_p12) target bundleno = 36 (0x24), region = 24 }
  0x17   : > { %s194_s28 = sand.u32 1, %s1274_s14   ;;  %s1049_s29 = sshll.u32 %s1282_s16, 7 }
  0x18   : > { %s996_s30 = sshll.u32 %s194_s28, 5  ;;  %s207_s6 = scalar_lea.hbm %s1584_s2, %s1049_s29 }
  0x19   : > { %s1094_s7 = scalar_select %p1365_p4, [#allocation0], [#allocation9] }
  0x1a   : > { %s198_s8 = scalar_lea.vmem [#allocation3], %s996_s30  ;;  %s1288_s11 = smov 256  }
  0x1b   : > { %s220_s9 = sshll.u32 %s198_s8, 4  ;;  %s212_s10 = sld [smem:[%s1094_s7]]   ;;  %s221_s9 = int_to_ptr.vmem [resolvable:$true] %s220_s9 }
  0x1c   : > { %1095 = sst [smem:[#allocation8]] (%p1365_p4), %s1288_s11  ;;  %s1289_s18 = smov 128  }
  0x1d   : > { %1096 = sst [smem:[#allocation8 + $0x1]] (%p1365_p4), %s1289_s18  ;;  %s1290_s19 = smov 2  }
  0x1e   : > { %1097 = sst [smem:[#allocation8 + $0x2]] (%p1365_p4), %s1290_s19  ;;  %s1291_s21 = smov 64  }
  0x1f   : > { %1098 = sst [smem:[#allocation8 + $0x3]] (%p1365_p4), %s1291_s21  ;;  %s1292_s29 = smov 4  }
  0x20   : > { %1099 = sst [smem:[#allocation8 + $0x4]] (%p1365_p4), %s1291_s21  ;;  %s195_s4 = scalar_lea.sflag [#allocation4], %s194_s28 }
  0x21   : > { %s999_s23 = sshll.u32 %s212_s10, 26  ;;  %1100 = sst [smem:[#allocation8 + $0x5]] (%p1365_p4), %s1292_s29 }
  0x22   : > { %s1000_s30 = sadd.s32 134217728, %s999_s23  ;;  %s1293_s5 = smov [#allocation7]  }
  0x23   : > { %1101 = dma.general (%p1365_p4), %s207_s6, 512, %s221_s9, %s195_s4, %s1293_s5, [#allocation8], %s1000_s30, 0  }
  0x24 PF: > { %p1001_p13 = scmp.ge.s32.totalorder %s1286_s17, 1  ;;  %p241_p0 = scmp.lt.s32.totalorder %s1286_s17, 3 }
  0x26   : > { %p242_p1 = pnand %p1001_p13, %p241_p0 }
  0x27   : > { %s1413_s7 = sand.u32 (!%p242_p1), 1, %s1270_s13  }
  0x28   : > { %245 = sbr.rel (%p242_p1) target bundleno = 455 (0x1c7), region = 32  ;;  %s1002_s8 = sshll.u32 (!%p242_p1), %s1413_s7, 5 }
  0x29   : > { %s248_s10 = scalar_lea.sflag (!%p242_p1), [#allocation4], %s1413_s7  ;;  %s1417_s11 = scalar_lea.vmem (!%p242_p1), [#allocation3], %s1002_s8 }
  0x2f   : > { %1257 = dma.done.wait (%p1371_p8), %s248_s10, 512  }
  0x30   : > { %1259 = vsyncadd (%p1371_p8), %s248_s10, 4294966784  ;;  %v1192_v0 = vld.sshfl [vmem:[%s1417_s11] sm:$0xff pattern:$0x76325410]  ;;  %s1294_s22 = smov 126   ;;  %v1295_v4 = vmov 0.0  }
  0x31   : > { %v1193_v1 = vld.sshfl [vmem:[%s1417_s11] sm:$0xff pattern:$0x76325410]  ;;  %359 = vrot.lane.b32.xlu1 %v1192_v0, %s1294_s22  ;;  %v1195_v3 = vld.sshfl [vmem:[%s1417_s11 + $0x8] sm:$0xff pattern:$0x76325410]  ;;  %1062 = vmatprep.subr.bf16.mxu0 %v1295_v4  ;;  %v358_v8 = vcombine.high %v1192_v0, %v1192_v0 }
  0x32   : > { %v1194_v2 = vld.sshfl [vmem:[%s1417_s11] sm:$0xff pattern:$0x76325410]  ;;  %s1296_s28 = smov 127   ;;  %v337_v5 = vcombine.low %v1193_v1, %v1193_v1  ;;  %1070 = vmatprep.subr.bf16.mxu1 %v1295_v4  ;;  %s1297_s24 = smov 125   ;;  %v472_v10 = vcombine.low %v1195_v3, %v1195_v3  ;;  %vm1298_vm0 = vmmov 0  }
  0x33   : > { %340 = vrot.lane.b32.xlu0 %v1193_v1, %s1296_s28  ;;  %v1196_v6 = vld.sshfl [vmem:[%s1417_s11 + $0x8] sm:$0xff pattern:$0x76325410]  ;;  %v379_v7 = vcombine.low %v1194_v2, %v1194_v2  ;;  %v1188_v9 = vld [vmem:[%s1417_s11] sm:$0x33]   ;;  %1066 = vmatprep.mubr.msk.bf16.mxu0 %vm1298_vm0, %v1295_v4  ;;  %v1299_v26 = vmov 0  }
  0x34   : > { %v1197_v11 = vld.sshfl [vmem:[%s1417_s11 + $0x8] sm:$0xff pattern:$0x76325410]  ;;  %v492_v12 = vcombine.high %v1196_v6, %v1196_v6  ;;  %v1198_v13 = vld.sshfl [vmem:[%s1417_s11 + $0x10] sm:$0xff pattern:$0x76325410]  ;;  %1074 = vmatprep.mubr.msk.bf16.mxu1 %vm1298_vm0, %v1295_v4  ;;  %1175 = vset.pattern.permute.xlu1 %v1299_v26 }
  0x35   : > { %382 = vrot.lane.b32.xlu1 %v1194_v2, %s1297_s24  ;;  %1004 = vst.sshfl [vmem:[#allocation2] sm:$0x33 pattern:$0x76325410] %v1188_v9  ;;  %v512_v15 = vcombine.low %v1197_v11, %v1197_v11  ;;  %v606_v16 = vcombine.low %v1198_v13, %v1198_v13  ;;  %v1016_v27 = vld [vmem:[%s1583_s1 + $0x4] sm:$0xf]  ;;  %1174 = vset.pattern.permute.xlu0 %v1299_v26 }
  0x36   : > { %v1199_v14 = vld.sshfl [vmem:[%s1417_s11 + $0x10] sm:$0xff pattern:$0x76325410]  ;;  %v1201_v19 = vld.sshfl [vmem:[%s1417_s11 + $0x18] sm:$0xff pattern:$0x76325410] }
  0x37   : > { %338 = vrot.lane.b32.xlu0 %v337_v5, %s1296_s28  ;;  %v1200_v17 = vld.sshfl [vmem:[%s1417_s11 + $0x10] sm:$0xff pattern:$0x76325410]  ;;  %v626_v18 = vcombine.high %v1199_v14, %v1199_v14  ;;  %v1202_v20 = vld.sshfl [vmem:[%s1417_s11 + $0x18] sm:$0xff pattern:$0x76325410]  ;;  %v740_v22 = vcombine.low %v1201_v19, %v1201_v19 }
  0x38   : > { %v646_v21 = vcombine.low %v1200_v17, %v1200_v17  ;;  %v1203_v23 = vld.sshfl [vmem:[%s1417_s11 + $0x18] sm:$0xff pattern:$0x76325410]  ;;  %v760_v24 = vcombine.high %v1202_v20, %v1202_v20  ;;  %v391_v28 = vld [vmem:[%s1583_s1] sm:$0xf]  ;;  %vm342_vm1 = vcmask 1039360  }
  0x39   : > { %475 = vrot.lane.b32.xlu1 %v1195_v3, %s1296_s28  ;;  %v780_v25 = vcombine.low %v1203_v23, %v1203_v23  ;;  %v1029_v29 = vld [vmem:[%s1583_s1 + $0x8] sm:$0xf]  ;;  %v1042_v30 = vld [vmem:[%s1583_s1 + $0xc] sm:$0xf]  ;;  %vm384_vm2 = vcmask 1022976   ;;  %vm363_vm3 = vcmask 1031168  }
  0x3a   : > { %v1189_v39 = vld [vmem:[%s1417_s11 + $0x8] sm:$0x33]   ;;  %v1190_v47 = vld [vmem:[%s1417_s11 + $0x10] sm:$0x33]   ;;  %vm397_vm4 = vcmask 261120   ;;  %s1003_s6 = sshll.u32 %s1413_s7, 4 }
  0x3b   : > { %380 = vrot.lane.b32.xlu0 %v379_v7, %s1297_s24  ;;  %v388_v54 = vld [vmem:[%s1582_s0] sm:$0x3]  ;;  %v1191_v62 = vld [vmem:[%s1417_s11 + $0x18] sm:$0x33]   ;;  %v1015_v63 = vld [vmem:[%s1582_s0 + $0x2] sm:$0x3] }
  0x3c   : > { %s1520_s9 = scalar_lea.vmem [#allocation6], %s1003_s6  ;;  %s1046_s19 = sshll.u32 %s1278_s15, 6 }
  0x3d   : > { %361 = vrot.lane.b32.xlu1 %v358_v8, %s1294_s22  ;;  %s864_s18 = sshll.u32 %s1520_s9, 4  ;;  %s1532_s29 = scalar_lea.hbm %s1585_s3, %s1046_s19  ;;  %s1527_s18 = int_to_ptr.vmem [resolvable:$true] %s864_s18 }
  0x3e   : > { %s848_s30 = scalar_lea.sflag [#allocation5], %s1413_s7  ;;  %s1204_s15 = scalar_lea.vmem %s1527_s18, 256 }
  0x3f   : > { %473 = vrot.lane.b32.xlu0 %v472_v10, %s1296_s28  ;;  %p1205_p2 = scmp.ne.s32.totalorder %s1527_s18, %s1204_s15  ;;  %s1300_s4 = smov [#allocation6]  }
  0x40   : > { %s1208_s5 = sshll.u32 %s1300_s4, 4  ;;  %s1209_s5 = int_to_ptr.vmem [resolvable:$false] %s1208_s5 }
  0x41   : > { %495 = vrot.lane.b32.xlu1 %v492_v12, %s1294_s22  ;;  %v1028_v12 = vld [vmem:[%s1582_s0 + $0x4] sm:$0x3]  ;;  %p1206_p3 = pnand %p1205_p2, %p1375_p9  ;;  %s1210_s8 = scalar_lea.vmem %s1209_s5, 512 }
  0x42   : > { %p1211_p5 = scmp.lt.s32.totalorder %s1527_s18, %s1209_s5  ;;  %p1212_p6 = scmp.lt.s32.totalorder %s1210_s8, %s1204_s15 }
  0x43   : > { %493 = vrot.lane.b32.xlu0 %v1196_v6, %s1294_s22  ;;  %p1207_p4 = pneg %p1206_p3 }
  0x44   : > { %p1213_p7 = por %p1212_p6, %p1211_p5 }
  0x45   : > { %515 = vrot.lane.b32.xlu1 %v1197_v11, %s1297_s24 }
  0x46   : > { %p1214_p8 = pnand %p1213_p7, %p1207_p4 }
  0x47   : > { %513 = vrot.lane.b32.xlu0 %v512_v15, %s1297_s24 }
  0x49   : > { %609 = vrot.lane.b32.xlu1 %v1198_v13, %s1296_s28 }
  0x4b   : > { %607 = vrot.lane.b32.xlu0 %v606_v16, %s1296_s28 }
  0x4d   : > { %629 = vrot.lane.b32.xlu1 %v626_v18, %s1294_s22  ;;  %v1041_v18 = vld [vmem:[%s1582_s0 + $0x6] sm:$0x3] }
  0x4f   : > { %627 = vrot.lane.b32.xlu0 %v1199_v14, %s1294_s22 }
  0x51   : > { %649 = vrot.lane.b32.xlu1 %v1200_v17, %s1297_s24 }
  0x53   : > { %647 = vrot.lane.b32.xlu0 %v646_v21, %s1297_s24 }
  0x55   : > { %743 = vrot.lane.b32.xlu1 %v1201_v19, %s1296_s28 }
  0x57   : > { %741 = vrot.lane.b32.xlu0 %v740_v22, %s1296_s28 }
  0x59   : > { %763 = vrot.lane.b32.xlu1 %v760_v24, %s1294_s22 }
  0x5b   : > { %761 = vrot.lane.b32.xlu0 %v1202_v20, %s1294_s22 }
  0x5d   : > { %783 = vrot.lane.b32.xlu1 %v1203_v23, %s1297_s24 }
  0x5f   : > { %781 = vrot.lane.b32.xlu0 %v780_v25, %s1297_s24 }
  0x61   : > { %528 = vperm.xlu1 %1175, %v1016_v27  }
  0x63   : > { %394 = vperm.xlu0 %1174, %v391_v28  }
  0x65   : > { %662 = vperm.xlu1 %1175, %v1029_v29  }
  0x67   : > { %796 = vperm.xlu0 %1174, %v1042_v30  }
  0xa3   : > { %v360_v31 = vpop.permute.xlu1 %359 }
  0xa5   : > { %v341_v32 = vpop.permute.xlu0 %340 }
  0xa7   : > { %v383_v33 = vpop.permute.xlu1 %382 }
  0xa9   : > { %v339_v34 = vpop.permute.xlu0 %338 }
  0xaa   : > { %v343_v35 = vsel %vm342_vm1, %v339_v34, %v341_v32 }
  0xab   : > { %345 = vst [vmem:[#allocation2] sm:$0xf0] %v343_v35  ;;  %v476_v36 = vpop.permute.xlu1 %475 }
  0xad   : > { %v381_v37 = vpop.permute.xlu0 %380 }
  0xae   : > { %v385_v38 = vsel %vm384_vm2, %v381_v37, %v383_v33 }
  0xaf   : > { %387 = vst [vmem:[#allocation2 + $0x8] sm:$0xf0] %v385_v38  ;;  %v362_v40 = vpop.permute.xlu1 %361 }
  0xb0   : > { %v364_v41 = vsel %vm363_vm3, %v360_v31, %v362_v40 }
  0xb1   : > { %v474_v42 = vpop.permute.xlu0 %473  ;;  %366 = vst [vmem:[#allocation2 + $0x8] sm:$0xf] %v364_v41 }
  0xb2   : > { %v389_v43 = vld [vmem:[#allocation2] sm:$0xff]  ;;  %v477_v44 = vsel %vm342_vm1, %v474_v42, %v476_v36 }
  0xb3   : > { %479 = vst [vmem:[#allocation2] sm:$0xf0] %v477_v44  ;;  %1063 = vmatpush3.bf16.msra.mxu0 %v389_v43  ;;  %1008 = vst.sshfl [vmem:[#allocation2] sm:$0x33 pattern:$0x76325410] %v1189_v39  ;;  %v496_v45 = vpop.permute.xlu1 %495 }
  0xb4   : > { %1064 = vmatprep.subr.bf16.mxu0 %v1295_v4 }
  0xb5   : > { %v494_v46 = vpop.permute.xlu0 %493 }
  0xb6   : > { %v497_v50 = vsel %vm363_vm3, %v494_v46, %v496_v45 }
  0xb7   : > { %v516_v48 = vpop.permute.xlu1 %515 }
  0xb8   : > { %v390_v49 = vld [vmem:[#allocation2 + $0x8] sm:$0xff] }
  0xb9   : > { %v514_v51 = vpop.permute.xlu0 %513  ;;  %499 = vst [vmem:[#allocation2 + $0x8] sm:$0xf] %v497_v50  ;;  %1065 = vmatpush3.bf16.msra.mxu0 %v390_v49 }
  0xba   : > { %v517_v52 = vsel %vm384_vm2, %v514_v51, %v516_v48  ;;  %v522_v53 = vld [vmem:[#allocation2] sm:$0xff]  ;;  %1078 = vmatprep.subr.bf16.mxu0 %v1295_v4 }
  0xbb   : > { %519 = vst [vmem:[#allocation2 + $0x8] sm:$0xf0] %v517_v52  ;;  %1071 = vmatpush3.bf16.msra.mxu1 %v522_v53  ;;  %1021 = vst.sshfl [vmem:[#allocation2] sm:$0x33 pattern:$0x76325410] %v1190_v47  ;;  %v610_v55 = vpop.permute.xlu1 %609 }
  0xbc   : > { %1072 = vmatprep.subr.bf16.mxu1 %v1295_v4  ;;  %1067 = vmatmul.mubr.msk.bf16.vlgmr.msra.gmra.mrb[0].mxu0 %vm397_vm4, %v388_v54 }
  0xbd   : > { %v608_v56 = vpop.permute.xlu0 %607  ;;  %1082 = vmatprep.mubr.msk.bf16.mxu0 %vm1298_vm0, %v1295_v4 }
  0xbe   : > { %v611_v57 = vsel %vm342_vm1, %v608_v56, %v610_v55 }
  0xbf   : > { %613 = vst [vmem:[#allocation2] sm:$0xf0] %v611_v57  ;;  %v630_v58 = vpop.permute.xlu1 %629 }
  0xc1   : > { %v628_v59 = vpop.permute.xlu0 %627 }
  0xc2   : > { %v631_v60 = vsel %vm363_vm3, %v628_v59, %v630_v58  ;;  %v523_v61 = vld [vmem:[#allocation2 + $0x8] sm:$0xff] }
  0xc3   : > { %1073 = vmatpush3.bf16.msra.mxu1 %v523_v61  ;;  %633 = vst [vmem:[#allocation2 + $0x8] sm:$0xf] %v631_v60  ;;  %v650_v0 = vpop.permute.xlu1 %649 }
  0xc4   : > { %1086 = vmatprep.subr.bf16.mxu1 %v1295_v4 }
  0xc5   : > { %v648_v1 = vpop.permute.xlu0 %647 }
  0xc6   : > { %v651_v2 = vsel %vm384_vm2, %v648_v1, %v650_v0  ;;  %v656_v3 = vld [vmem:[#allocation2] sm:$0xff]  ;;  %1075 = vmatmul.mubr.msk.bf16.vlgmr.msra.gmra.mrb[0].mxu1 %vm397_vm4, %v1015_v63 }
  0xc7   : > { %653 = vst [vmem:[#allocation2 + $0x8] sm:$0xf0] %v651_v2  ;;  %1079 = vmatpush3.bf16.msra.mxu0 %v656_v3  ;;  %1034 = vst.sshfl [vmem:[#allocation2] sm:$0x33 pattern:$0x76325410] %v1191_v62  ;;  %1090 = vmatprep.mubr.msk.bf16.mxu1 %vm1298_vm0, %v1295_v4  ;;  %v744_v5 = vpop.permute.xlu1 %743 }
  0xc8   : > { %1080 = vmatprep.subr.bf16.mxu0 %v1295_v4 }
  0xc9   : > { %v742_v6 = vpop.permute.xlu0 %741 }
  0xca   : > { %v745_v7 = vsel %vm342_vm1, %v742_v6, %v744_v5 }
  0xcb   : > { %747 = vst [vmem:[#allocation2] sm:$0xf0] %v745_v7  ;;  %v764_v8 = vpop.permute.xlu1 %763 }
  0xcd   : > { %v762_v9 = vpop.permute.xlu0 %761 }
  0xce   : > { %v765_v10 = vsel %vm363_vm3, %v762_v9, %v764_v8  ;;  %v657_v11 = vld [vmem:[#allocation2 + $0x8] sm:$0xff] }
  0xcf   : > { %1081 = vmatpush3.bf16.msra.mxu0 %v657_v11  ;;  %767 = vst [vmem:[#allocation2 + $0x8] sm:$0xf] %v765_v10  ;;  %v784_v13 = vpop.permute.xlu1 %783 }
  0xd1   : > { %v782_v14 = vpop.permute.xlu0 %781 }
  0xd2   : > { %v785_v15 = vsel %vm384_vm2, %v782_v14, %v784_v13  ;;  %v790_v16 = vld [vmem:[#allocation2] sm:$0xff]  ;;  %1083 = vmatmul.mubr.msk.bf16.vlgmr.msra.gmra.mrb[4].mxu0 %vm397_vm4, %v1028_v12 }
  0xd3   : > { %787 = vst [vmem:[#allocation2 + $0x8] sm:$0xf0] %v785_v15  ;;  %1087 = vmatpush3.bf16.msra.mxu1 %v790_v16 }
  0xd4   : > { %1088 = vmatprep.subr.bf16.mxu1 %v1295_v4 }
  0xda   : > { %v791_v17 = vld [vmem:[#allocation2 + $0x8] sm:$0xff] }
  0xdb   : > { %1089 = vmatpush3.bf16.msra.mxu1 %v791_v17 }
  0xde   : > { %1091 = vmatmul.mubr.msk.bf16.vlgmr.msra.gmra.mrb[4].mxu1 %vm397_vm4, %v1041_v18 }
  0xe0   : > { %v529_v4 = vpop.permute.xlu1 %528 }
  0xe2   : > { %v395_v19 = vpop.permute.xlu0 %394 }
  0xe4   : > { %v663_v34 = vpop.permute.xlu1 %662 }
  0xe6   : > { %v797_v42 = vpop.permute.xlu0 %796 }
 0x18f   : > { %v435_v20 = vpop.f32.mrb[0].mxu0 }
 0x190   : > { %v436_v21 = vadd.f32 %v435_v20, %v395_v19  ;;  %v1068_v22 = vpop.f32.mrb[1].mxu0 }
 0x191   : > { %v438_v23 = vpop.f32.mrb[2].mxu0 }
 0x192   : > { %vm441_vm5 = vcmp.ge.f32.partialorder %v436_v21, 0.0  ;;  %v442_v24 = vmul.f32 0.1, %v436_v21  ;;  %v1069_v25 = vpop.f32.mrb[3].mxu0 }
 0x194   : > { %v443_v26 = vsel %vm441_vm5, %v436_v21, %v442_v24 }
 0x195   : > { %444 = vst [vmem:[%s1520_s9] sm:$0xf] %v443_v26 }
 0x199   : > { %v568_v27 = vpop.f32.mrb[0].mxu1 }
 0x19a   : > { %v569_v28 = vadd.f32 %v568_v27, %v529_v4  ;;  %v1076_v29 = vpop.f32.mrb[1].mxu1 }
 0x19b   : > { %v571_v30 = vpop.f32.mrb[2].mxu1 }
 0x19c   : > { %vm574_vm6 = vcmp.ge.f32.partialorder %v569_v28, 0.0  ;;  %v575_v31 = vmul.f32 0.1, %v569_v28  ;;  %v1077_v32 = vpop.f32.mrb[3].mxu1 }
 0x19e   : > { %v576_v33 = vsel %vm574_vm6, %v569_v28, %v575_v31 }
 0x19f   : > { %1018 = vst [vmem:[%s1520_s9 + $0x4] sm:$0xf] %v576_v33 }
 0x1a5   : > { %v702_v35 = vpop.f32.mrb[4].mxu0 }
 0x1a6   : > { %v703_v36 = vadd.f32 %v702_v35, %v663_v34  ;;  %v1084_v37 = vpop.f32.mrb[5].mxu0 }
 0x1a7   : > { %v705_v38 = vpop.f32.mrb[6].mxu0 }
 0x1a8   : > { %vm708_vm7 = vcmp.ge.f32.partialorder %v703_v36, 0.0  ;;  %v709_v39 = vmul.f32 0.1, %v703_v36  ;;  %v1085_v40 = vpop.f32.mrb[7].mxu0 }
 0x1aa   : > { %v710_v41 = vsel %vm708_vm7, %v703_v36, %v709_v39 }
 0x1ab   : > { %1031 = vst [vmem:[%s1520_s9 + $0x8] sm:$0xf] %v710_v41 }
 0x1b1   : > { %v836_v43 = vpop.f32.mrb[4].mxu1 }
 0x1b2   : > { %v837_v44 = vadd.f32 %v836_v43, %v797_v42  ;;  %v1092_v45 = vpop.f32.mrb[5].mxu1 }
 0x1b3   : > { %v839_v46 = vpop.f32.mrb[6].mxu1 }
 0x1b4   : > { %vm842_vm8 = vcmp.ge.f32.partialorder %v837_v44, 0.0  ;;  %v843_v47 = vmul.f32 0.1, %v837_v44  ;;  %v1093_v48 = vpop.f32.mrb[7].mxu1 }
 0x1b6   : > { %v844_v49 = vsel %vm842_vm8, %v837_v44, %v843_v47 }
 0x1b7   : > { %1044 = vst [vmem:[%s1520_s9 + $0xc] sm:$0xf] %v844_v49 }
 0x1b8   : > { %1217 = shalt.err (!%p1214_p8)
}
 0x1b9   : > { %s1218_s10 = scalar_lea.hbm %s1532_s29, 256  ;;  %s1222_s28 = scalar_lea.hbm %s1585_s3, 512 }
 0x1ba   : > { %p1219_p10 = scmp.ne.s32.totalorder %s1532_s29, %s1218_s10  ;;  %p1223_p1 = scmp.lt.u32.totalorder %s1532_s29, %s1585_s3 }
 0x1bb   : > { %p1224_p2 = scmp.lt.u32.totalorder %s1222_s28, %s1218_s10  ;;  %p1226_p4 = scmp.lt.u32.totalorder %s1218_s10, %s1532_s29 }
 0x1bc   : > { %p1220_p13 = pnand %p1219_p10, %p1375_p9 }
 0x1bd   : > { %p1225_p3 = por %p1224_p2, %p1223_p1 }
 0x1be   : > { %p1221_p0 = pneg %p1220_p13 }
 0x1bf   : > { %p1227_p5 = por %p1226_p4, %p1225_p3 }
 0x1c1   : > { %p1228_p6 = pnand %p1227_p5, %p1221_p0 }
 0x1c3   : > { %1231 = shalt.err (!%p1228_p6)
}
 0x1c4   : > { %s1301_s9 = smov 64   ;;  %s1302_s19 = smov 128  }
 0x1c5   : > { %s1303_s21 = smov 4  }
 0x1c6   : > { %1103 = dma.vmem_to_hbm [thread:$0]  (%p1375_p9), %s1527_s18, 256, %s1532_s29, %s848_s30, %s1301_s9, %s1302_s19, %s1303_s21  }
 0x1c7 PF: > { %s879_s23 = sand.u32 1, %s1266_s12   ;;  %p1106_p7 = pnand %p995_p12, %p1382_p11 }
 0x1c8   : > { %s880_s15 = scalar_lea.sflag [#allocation5], %s879_s23 }
 0x1c9   : > { %1261 = dma.done.wait (!%p1106_p7), %s880_s15, 256  }
 0x1ca   : > { %1263 = vsyncadd (!%p1106_p7), %s880_s15, 4294967040  ;;  %s19_s17 = sadd.s32 1, %s1286_s17   ;;  %s1590_s12 = smov %s1270_s13 }
 0x1cb   : > { %p16_p8 = scmp.ge.s32.totalorder %s19_s17, 4   ;;  %s1591_s13 = smov %s1274_s14 }
 0x1cc   : > { %s1592_s14 = smov %s1380_s26  ;;  %s1593_s15 = smov %s1282_s16 }
 0x1cd   : > { %s1594_s16 = smov %s1596_s20  ;;  %18 = sbr.rel (!%p16_p8) target bundleno = 6 (0x6), region = 100 }
 0x1d4   :  { %885 = vsyncpa [#allocation4], 1 }
 0x1d5   :  { %887 = vsyncpa [#allocation4 + $0x1], 1 }
 0x1d6   :  { %888 = vsyncpa [#allocation5], 1 }
 0x1d7   :  { %890 = vsyncpa [#allocation5 + $0x1], 1 }

</bundles_post_ra>
